<compile_context>
chip_gen: v5e
topology: v5e:2x2
jax: 0.10.0
libtpu: 0.0.40
codegen_flags: <defaults>
</compile_context>

<pallas_src>
import functools

import jax
import jax.numpy as jnp
from jax import lax
from jax.experimental import pallas as pl
from jax.experimental.pallas import tpu as pltpu

EPS_DEFAULT = 1e-8


def _round_up(x: int, m: int) -> int:
    return (x + m - 1) // m * m


def _sublane(itemsize: int) -> int:
    # Native sublane packing: f32 -> 8, bf16 -> 16, int8/fp8 -> 32.
    return max(8, 32 // max(int(itemsize), 1))


def _vmem_plan():
    """Return (scoped vmem_limit_bytes, planning budget bytes, per-block floor bytes)."""
    phys = 64 * 1024 * 1024  # conservative fallback (v7x-safe)
    try:
        phys = int(pltpu.get_tpu_info().vmem_capacity_bytes)
    except Exception:
        pass
    # Scoped limit: ~3/4 of physical, capped at 96 MiB (v7x: 48 MiB, v5e/v6e: 96 MiB).
    limit = min((phys * 3) // 4, 96 * 1024 * 1024)
    # Planning budget leaves headroom inside the scoped limit for compiler temps.
    budget = (limit * 5) // 6
    # Block-size floor (amortize ~0.35us/step against HBM bandwidth).
    floor = 8 * 1024 * 1024 if phys <= 64 * 1024 * 1024 else 4 * 1024 * 1024
    return limit, budget, floor


def _choose_row_tile(rows: int, hw: int, itemsize: int, budget: int, floor_bytes: int):
    """Sublane-aligned row tile for the single-pass (full-HW-per-block) path.

    Returns None when even a single sublane-tile of rows at full HW exceeds the VMEM
    budget (huge HW) -- caller must use the spatially-split two-pass path.
    """
    sub = _sublane(itemsize)
    hw_pad = _round_up(max(hw, 1), 128)          # lane axis padded to 128 in VMEM
    rows_pad = _round_up(rows, sub)
    # Per-row footprint: 2x double-buffered input + 2x output + ~2 f32 compute temps.
    per_row_fp = hw_pad * (4 * itemsize + 8)
    tr_cap = (budget // per_row_fp) // sub * sub
    if tr_cap < sub:
        return None
    tr_cap = min(tr_cap, rows_pad)
    # Target >= 8 grid steps (pipelining on one TC, >= 4 steps per TC on v7x megacore).
    tr_steps = max(sub, ((rows // 8) // sub) * sub)
    tr = min(tr_cap, tr_steps)
    # Block-size floor: prefer bigger blocks over step count for small/medium arrays.
    per_row_block = hw_pad * itemsize
    tr_floor = min(tr_cap, _round_up((floor_bytes + per_row_block - 1) // per_row_block, sub))
    return max(tr, tr_floor)


# ----------------------------- kernels ---------------------------------------


def _norm_full_kernel(x_ref, o_ref, *, inv_hw, eps):
    # Block is (TR, HW): each row is one (n, c) instance with its full spatial extent.
    x = x_ref[...].astype(jnp.float32)
    mu = jnp.sum(x, axis=1, keepdims=True) * inv_hw            # XLU lane reduce
    xc = x - mu                                                # needed for output anyway
    var = jnp.sum(xc * xc, axis=1, keepdims=True) * inv_hw     # centered variance
    o_ref[...] = (xc * lax.rsqrt(var + eps)).astype(o_ref.dtype)  # rsqrt -> EUP


def _stats_kernel(x_ref, mu_ref, inv_ref, s_sc, ss_sc, *, inv_hw, eps, hw, thw, masked):
    # Pass 1 of the huge-HW path: accumulate per-row sum / sum-of-squares over HW tiles.
    j = pl.program_id(1)

    @pl.when(j == 0)
    def _():
        s_sc[...] = jnp.zeros_like(s_sc)
        ss_sc[...] = jnp.zeros_like(ss_sc)

    x = x_ref[...].astype(jnp.float32)
    if masked:  # ragged last HW tile: zero out padded lanes so they don't pollute sums
        col = j * thw + lax.broadcasted_iota(jnp.int32, x.shape, 1)
        x = jnp.where(col < hw, x, 0.0)
    s_sc[...] += jnp.sum(x, axis=1, keepdims=True)
    ss_sc[...] += jnp.sum(x * x, axis=1, keepdims=True)

    @pl.when(j == pl.num_programs(1) - 1)
    def _():
        mu = s_sc[...] * inv_hw
        # Across-tile stats use E[x^2]-mu^2 (clamped >= 0); the resident-block main
        # path uses the exactly-centered form.
        var = jnp.maximum(ss_sc[...] * inv_hw - mu * mu, 0.0)
        mu_ref[...] = mu
        inv_ref[...] = lax.rsqrt(var + eps)


def _apply_kernel(x_ref, mu_ref, inv_ref, o_ref):
    # Pass 2 of the huge-HW path: normalize with the precomputed per-row stats.
    x = x_ref[...].astype(jnp.float32)
    o_ref[...] = ((x - mu_ref[...]) * inv_ref[...]).astype(o_ref.dtype)


# ----------------------------- wrapper ---------------------------------------


def instance_norm(x, eps: float = EPS_DEFAULT, *, _force_split_thw=None):
    """InstanceNorm over spatial dims for NCHW input (StyleGAN convention)."""
    N, C, H, W = x.shape
    HW = H * W
    rows = N * C
    xf = x.reshape(rows, HW)  # free reshape for contiguous NCHW
    itemsize = int(jnp.dtype(x.dtype).itemsize)
    limit, budget, floor_bytes = _vmem_plan()
    inv_hw = 1.0 / float(HW)

    tr = None
    if _force_split_thw is None:
        tr = _choose_row_tile(rows, HW, itemsize, budget, floor_bytes)

    if tr is not None:
        # ---- single-pass path: full HW per block ----
        grid = (pl.cdiv(rows, tr),)
        out = pl.pallas_call(
            functools.partial(_norm_full_kernel, inv_hw=inv_hw, eps=float(eps)),
            out_shape=jax.ShapeDtypeStruct((rows, HW), x.dtype),
            grid=grid,
            in_specs=[pl.BlockSpec((tr, HW), lambda i: (i, 0))],
            out_specs=pl.BlockSpec((tr, HW), lambda i: (i, 0)),
            compiler_params=pltpu.CompilerParams(
                dimension_semantics=("parallel",),
                vmem_limit_bytes=limit,
            ),
        )(xf)
        return out.reshape(N, C, H, W)

    # ---- spatially-split two-pass path (huge HW) ----
    tr = _sublane(itemsize)
    if _force_split_thw is not None:
        thw = int(_force_split_thw)
    else:
        thw_cap = (budget // (tr * (4 * itemsize + 8))) // 128 * 128
        thw = max(128, thw_cap)  # auto path only triggers when thw_cap < round_up(HW,128)
    masked = (HW % thw) != 0
    nrt = pl.cdiv(rows, tr)
    nhw = pl.cdiv(HW, thw)

    mu, inv_std = pl.pallas_call(
        functools.partial(
            _stats_kernel, inv_hw=inv_hw, eps=float(eps), hw=HW, thw=thw, masked=masked
        ),
        out_shape=(
            jax.ShapeDtypeStruct((rows, 1), jnp.float32),
            jax.ShapeDtypeStruct((rows, 1), jnp.float32),
        ),
        grid=(nrt, nhw),
        in_specs=[pl.BlockSpec((tr, thw), lambda i, j: (i, j))],
        out_specs=(
            pl.BlockSpec((tr, 1), lambda i, j: (i, 0)),
            pl.BlockSpec((tr, 1), lambda i, j: (i, 0)),
        ),
        scratch_shapes=[
            pltpu.VMEM((tr, 1), jnp.float32),
            pltpu.VMEM((tr, 1), jnp.float32),
        ],
        compiler_params=pltpu.CompilerParams(
            dimension_semantics=("parallel", "arbitrary"),
            vmem_limit_bytes=limit,
        ),
    )(xf)

    out = pl.pallas_call(
        _apply_kernel,
        out_shape=jax.ShapeDtypeStruct((rows, HW), x.dtype),
        grid=(nrt, nhw),
        in_specs=[
            pl.BlockSpec((tr, thw), lambda i, j: (i, j)),
            pl.BlockSpec((tr, 1), lambda i, j: (i, 0)),
            pl.BlockSpec((tr, 1), lambda i, j: (i, 0)),
        ],
        out_specs=pl.BlockSpec((tr, thw), lambda i, j: (i, j)),
        compiler_params=pltpu.CompilerParams(
            dimension_semantics=("parallel", "parallel"),
            vmem_limit_bytes=limit,
        ),
    )(xf, mu, inv_std)
    return out.reshape(N, C, H, W)


if __name__ == "__main__":
    def _ref(x, eps=EPS_DEFAULT):
        xf = x.astype(jnp.float32)
        mu = jnp.mean(xf, axis=(2, 3), keepdims=True)
        xc = xf - mu
        r = xc * lax.rsqrt(jnp.mean(xc * xc, axis=(2, 3), keepdims=True) + eps)
        return r.astype(x.dtype)

    # 1) main single-pass path (small StyleGAN-ish activation)
    x1 = jax.random.normal(jax.random.PRNGKey(0), (2, 4, 16, 16), jnp.float32)
    o1 = jax.block_until_ready(instance_norm(x1))
    assert o1.shape == x1.shape, o1.shape
    assert float(jnp.max(jnp.abs(o1 - _ref(x1)))) < 1e-4

    # 2) ragged row count (N*C not a multiple of the sublane tile -> padded last block)
    x2 = jax.random.normal(jax.random.PRNGKey(1), (2, 3, 16, 16), jnp.float32)
    o2 = jax.block_until_ready(instance_norm(x2))
    assert float(jnp.max(jnp.abs(o2 - _ref(x2)))) < 1e-4

    # 3) spatially-split two-pass path (forced; exercises ragged HW tiles + lane mask)
    x3 = jax.random.normal(jax.random.PRNGKey(2), (2, 4, 32, 32), jnp.float32)
    o3 = jax.block_until_ready(instance_norm(x3, _force_split_thw=384))
    assert float(jnp.max(jnp.abs(o3 - _ref(x3)))) < 1e-4

    # 4) bf16 input (dtype-aware tiling)
    x4 = jax.random.normal(jax.random.PRNGKey(3), (2, 4, 16, 16), jnp.float32).astype(jnp.bfloat16)
    o4 = jax.block_until_ready(instance_norm(x4))
    err4 = float(jnp.max(jnp.abs(o4.astype(jnp.float32) - _ref(x4).astype(jnp.float32))))
    assert err4 < 3e-2, err4

    print("KERNEL_OK")
</pallas_src>

<mosaic_0001>
module attributes {stable_mosaic.version = 11 : i64} {
  func.func @_norm_full_kernel(%arg0: i32, %arg1: memref<8x256xf32, #tpu.memory_space<vmem>>, %arg2: memref<8x256xf32, #tpu.memory_space<vmem>>) attributes {dimension_semantics = [#tpu.dimension_semantics<parallel>], iteration_bounds = array<i64: 1>, scalar_prefetch = 0 : i64, scratch_operands = 0 : i64, tpu.core_type = #tpu.core_type<tc>, window_params = [{transform_indices = @transform_0, window_bounds = array<i64: 8, 256>}, {transform_indices = @transform_1, window_bounds = array<i64: 8, 256>}]} {
    %c0 = arith.constant 0 : index
    %c0_0 = arith.constant 0 : index
    %0 = vector.load %arg1[%c0, %c0_0] : memref<8x256xf32, #tpu.memory_space<vmem>>, vector<8x256xf32>
    %cst = arith.constant dense<0.000000e+00> : vector<8xf32>
    %1 = vector.multi_reduction <add>, %0, %cst [1] : vector<8x256xf32> to vector<8xf32>
    %2 = vector.shape_cast %1 : vector<8xf32> to vector<8x1xf32>
    %cst_1 = arith.constant 3.906250e-03 : f32
    %3 = vector.broadcast %cst_1 : f32 to vector<8x1xf32>
    %4 = arith.mulf %2, %3 : vector<8x1xf32>
    %5 = vector.broadcast %4 : vector<8x1xf32> to vector<8x256xf32>
    %6 = arith.subf %0, %5 : vector<8x256xf32>
    %7 = arith.mulf %6, %6 : vector<8x256xf32>
    %cst_2 = arith.constant dense<0.000000e+00> : vector<8xf32>
    %8 = vector.multi_reduction <add>, %7, %cst_2 [1] : vector<8x256xf32> to vector<8xf32>
    %9 = vector.shape_cast %8 : vector<8xf32> to vector<8x1xf32>
    %cst_3 = arith.constant 3.906250e-03 : f32
    %10 = vector.broadcast %cst_3 : f32 to vector<8x1xf32>
    %11 = arith.mulf %9, %10 : vector<8x1xf32>
    %cst_4 = arith.constant 9.99999993E-9 : f32
    %12 = vector.broadcast %cst_4 : f32 to vector<8x1xf32>
    %13 = arith.addf %11, %12 : vector<8x1xf32>
    %14 = math.rsqrt %13 : vector<8x1xf32>
    %15 = vector.broadcast %14 : vector<8x1xf32> to vector<8x256xf32>
    %16 = arith.mulf %6, %15 : vector<8x256xf32>
    %c0_5 = arith.constant 0 : index
    %c0_6 = arith.constant 0 : index
    %17 = vector.load %arg2[%c0_5, %c0_6] : memref<8x256xf32, #tpu.memory_space<vmem>>, vector<8x256xf32>
    tpu.vector_store %arg2[%c0_5, %c0_6], %16 {strides = array<i32>} : memref<8x256xf32, #tpu.memory_space<vmem>>, vector<8x256xf32>,
    return
  }
  func.func @transform_0(%arg0: i32) -> (i32, i32) {
    %c0_i32 = arith.constant 0 : i32
    %c0_i32_0 = arith.constant 0 : i32
    return %arg0, %c0_i32 : i32, i32
  }
  func.func @transform_1(%arg0: i32) -> (i32, i32) {
    %c0_i32 = arith.constant 0 : i32
    %c0_i32_0 = arith.constant 0 : i32
    return %arg0, %c0_i32 : i32, i32
  }
}

</mosaic_0001>

<bundles_post_ra>
// kernel: tpu_custom_call.1
= control target key start
LH: loop header
LB: loop body
LE: loop exit
PB: predicated region body
PF: predicated region fallthrough
CT: control target
= control target key end

     0   :  { %6 = vsyncpa [#allocation3], 0  ;;  %s143_s0 = inlined_call_operand.hbm [shape: f32[8,256], index: 0, kind: input, shape index: {}]   ;;  %s144_s1 = inlined_call_operand.hbm [shape: f32[8,256], index: 1, kind: output, shape index: {}]  }
   0x1   :  { %7 = vsyncpa [#allocation4], 0  ;;  %s13_s8 = sshll.u32 %s143_s0, 4  ;;  %s125_s9 = smov [#allocation2]   ;;  %s14_s8 = int_to_ptr.hbm [resolvable:$true] %s13_s8 }
   0x2   :  { %s15_s10 = sshll.u32 %s125_s9, 4  ;;  %s16_s10 = int_to_ptr.vmem [resolvable:$true] %s15_s10 }
   0x3   :  { %18 = dma.hbm_to_vmem [thread:$0]  %s14_s8, 256, %s16_s10, [#allocation3]  }
   0x4   :  { %121 = dma.done.wait [#allocation3], 256  }
   0x5   :  { %122 = vsyncadd [#allocation3], 4294967040  ;;  %v23_v0 = vld [vmem:[#allocation2] sm:$0xff]  ;;  %v24_v1 = vld [vmem:[#allocation2 + $0x8] sm:$0xff]  ;;  %s126_s0 = smov [#allocation5]   ;;  %s59_s14 = sshll.u32 %s144_s1, 4  ;;  %s60_s14 = int_to_ptr.hbm [resolvable:$true] %s59_s14 }
   0x6   :  { %v25_v2 = vadd.f32 %v24_v1, %v23_v0  ;;  %s57_s11 = sshll.u32 %s126_s0, 4  ;;  %s58_s11 = int_to_ptr.vmem [resolvable:$true] %s57_s11 }
   0x8   :  { %26 = vadd.xlane.f32.xlu0 %v25_v2 }
  0x7b   :  { %v27_v3 = vpop.xlane.xlu0 %26 }
  0x7c   :  { %v28_v4 = vmul.f32 0.00390625, %v27_v3 }
  0x7e   :  { %v29_v5 = vsub.f32 %v23_v0, %v28_v4  ;;  %v30_v6 = vsub.f32 %v24_v1, %v28_v4 }
  0x80   :  { %v31_v7 = vmul.f32 %v29_v5, %v29_v5  ;;  %v32_v8 = vmul.f32 %v30_v6, %v30_v6 }
  0x82   :  { %v33_v9 = vadd.f32 %v32_v8, %v31_v7 }
  0x84   :  { %34 = vadd.xlane.f32.xlu0 %v33_v9 }
  0xf7   :  { %v35_v10 = vpop.xlane.xlu0 %34 }
  0xf8   :  { %v36_v11 = vmul.f32 0.00390625, %v35_v10 }
  0xfa   :  { %v37_v12 = vadd.f32 1e-08, %v36_v11 }
  0xfc   :  { %71 = vrsqrt.f32 %v37_v12  ;;  %vm44_vm1 = vweird.f32 %v37_v12 }
 0x102   :  { %v72_v13 = vpop.eup %71 }
 0x103   :  { %v39_v14 = vmul.f32 %v72_v13, %v37_v12  ;;  %vm45_vm0 = vweird.f32 %v72_v13 }
 0x104   :  { %vm46_vm2 = vmor %vm44_vm1, %vm45_vm0 }
 0x105   :  { %v40_v15 = vmul.f32 %v72_v13, %v39_v14 }
 0x107   :  { %v41_v16 = vmul.f32 0.5, %v40_v15 }
 0x109   :  { %v42_v17 = vsub.f32 1.5, %v41_v16 }
 0x10b   :  { %v43_v18 = vmul.f32 %v72_v13, %v42_v17 }
 0x10d   :  { %v47_v19 = vsel %vm46_vm2, %v72_v13, %v43_v18 }
 0x10e   :  { %v48_v20 = vmul.f32 %v47_v19, %v29_v5  ;;  %v49_v21 = vmul.f32 %v47_v19, %v30_v6 }
 0x110   :  { %50 = vst [vmem:[#allocation5] sm:$0xff] %v48_v20 }
 0x111   :  { %51 = vst [vmem:[#allocation5 + $0x8] sm:$0xff] %v49_v21 }
 0x112   :  { %62 = dma.vmem_to_hbm [thread:$0]  %s58_s11, 256, %s60_s14, [#allocation4]  }
 0x113   :  { %123 = dma.done.wait [#allocation4], 256  }
 0x114   :  { %124 = vsyncadd [#allocation4], 4294967040 }
 0x115   :  { %67 = vsyncpa [#allocation3], 1 }
 0x116   :  { %68 = vsyncpa [#allocation4], 1 }

</bundles_post_ra>
